<compile_context>
chip_gen: v5e
topology: v5e:2x2
jax: 0.10.0
libtpu: 0.0.40
codegen_flags: <defaults>
</compile_context>

<pallas_src>
import functools

import numpy as np
import jax
import jax.numpy as jnp
from jax import lax
from jax.experimental import pallas as pl
from jax.experimental.pallas import tpu as pltpu


def _pick_spatial_tile(spatial_p, rows, itemsize, *, budget_bytes=32 << 20,
                       cap_lanes=16384):
    """Largest 128-multiple tile dividing spatial_p, bounded by a VMEM budget.

    Budget covers the double-buffered streamed block: 2 * rows * tile *
    itemsize <= budget_bytes.  spatial_p must already be a multiple of 128.
    """
    max_lanes = max(128, budget_bytes // (2 * rows * itemsize))
    max_lanes = min(max_lanes, cap_lanes, spatial_p)
    t = max_lanes - (max_lanes % 128)
    while t > 128 and spatial_p % t:
        t -= 128
    return max(t, 128)


def _clip_fused_kernel(logit_sigmoid, eps, inv_spatial, n_lane_chunks,
                       x_ref, hid_ref, sel_ref, w_img_ref, b_img_ref,
                       w_txt_ref, b_txt_ref, logit_scale_ref,
                       img_out_ref, txt_out_ref, lpi_ref,
                       acc_ref):
    s = pl.program_id(0)

    # ---- init pooling accumulator on the first spatial block ---------------
    @pl.when(s == 0)
    def _():
        acc_ref[...] = jnp.zeros_like(acc_ref)

    # ---- global-average-pool accumulation (hot loop) ------------------------
    # Streamed block is (B*C, ts): sublanes full.  Add 128-lane chunks into a
    # lane-width partial accumulator -> VPU adds only, no per-step XLU reduce.
    part = acc_ref[...]
    for j in range(n_lane_chunks):
        part = part + x_ref[:, j * 128:(j + 1) * 128].astype(jnp.float32)
    acc_ref[...] = part

    # ---- last block: projections, L2 norm, logits --------------------------
    @pl.when(s == pl.num_programs(0) - 1)
    def _():
        # single cross-lane reduce of the partial sums (one XLU op, final step)
        pooled = jnp.sum(acc_ref[...], axis=1, keepdims=True) * inv_spatial  # (B*C,1)

        # stand-in image projection: (B,C)@(C,F) folded into
        #   sel(B,B*C) @ (pooled(B*C,1) * w_img_tiled(B*C,F))
        # -> no tiny reshape/transpose of the pooled vector; f32 MXU.
        contrib = pooled * w_img_ref[...]                                    # VPU
        img_feat = jnp.dot(sel_ref[...], contrib,
                           preferred_element_type=jnp.float32) + b_img_ref[...]

        # BertPooler_D: dense(hidden_states[:, 0]); act=False => no tanh.
        txt_feat = jnp.dot(hid_ref[...].astype(jnp.float32), w_txt_ref[...],
                           preferred_element_type=jnp.float32) + b_txt_ref[...]

        # L2 normalize with norm.clamp(min=eps):
        #   x / max(||x||, eps) == x * rsqrt(max(||x||^2, eps^2))
        img_ss = jnp.sum(img_feat * img_feat, axis=1, keepdims=True)
        img_n = img_feat * lax.rsqrt(jnp.maximum(img_ss, eps * eps))
        txt_ss = jnp.sum(txt_feat * txt_feat, axis=1, keepdims=True)
        txt_n = txt_feat * lax.rsqrt(jnp.maximum(txt_ss, eps * eps))

        img_out_ref[...] = img_n
        txt_out_ref[...] = txt_n

        # logits: exp(clamp(logit_scale, 0, 4.6052)) * img @ text^T
        # Contract the feature dim of BOTH operands (no XLU transpose of txt_n).
        scale = jnp.exp(jnp.clip(logit_scale_ref[0], 0.0, 4.6052))
        logits = scale * lax.dot_general(
            img_n, txt_n, (((1,), (1,)), ((), ())),
            preferred_element_type=jnp.float32)                             # (B,B)
        if logit_sigmoid:
            # EUP logistic; sigmoid(X).T == sigmoid(X.T), so the wrapper-side
            # transpose for logits_per_text stays valid.
            logits = jax.nn.sigmoid(logits)
        lpi_ref[...] = logits
        # logits_per_text = logits_per_image.T is produced in the wrapper
        # (drops the in-kernel XLU transpose + second masked (B,B) store).


def clip_both_forward(x_img, hidden_states, params, *,
                      return_logit=True, logit_sigmoid=False, eps=1e-8):
    """Functional equivalent of CLIP_Both_model.forward (post-encoder math).

    x_img:          (B, C, D, H, W)  (NCDHW), any float dtype
    hidden_states:  (B, S, 768)      (text_encoder.last_hidden_state)
    """
    B, C = x_img.shape[0], x_img.shape[1]
    spatial = int(np.prod(x_img.shape[2:]))
    S, HID = hidden_states.shape[1], hidden_states.shape[2]
    feat = params["w_txt"].shape[1]
    BC = B * C

    # Stream the image volume in its NATIVE dtype (cast to f32 per tile inside
    # the kernel); (B, C) collapsed so the streamed block fills vreg sublanes.
    x3 = x_img.reshape(BC, spatial)
    spatial_p = spatial if spatial % 128 == 0 else ((spatial + 127) // 128) * 128
    if spatial_p != spatial:
        # TODO(synk): fuse the ragged tail as a masked block instead of padding.
        x3 = jnp.pad(x3, ((0, 0), (0, spatial_p - spatial)))

    # Metadata-only view: the kernel DMAs only lanes [0:HID) of each row
    # (token 0), so no hid0 intermediate is materialized in HBM.
    hid2d = hidden_states.reshape(B, S * HID)

    # Final-step matmuls stay f32 for parity with the PyTorch reference (they
    # are tiny at this point); sel/w_img_tiled implement (B,C)@(C,feat) without
    # any in-kernel reshape of the collapsed pooled vector.
    w_img_tiled = jnp.tile(params["w_img"].astype(jnp.float32), (B, 1))      # (B*C, feat)
    sel = (jnp.arange(BC, dtype=jnp.int32)[None, :] // C
           == jnp.arange(B, dtype=jnp.int32)[:, None]).astype(jnp.float32)   # (B, B*C)
    b_img = params["b_img"].astype(jnp.float32)
    w_txt = params["w_txt"].astype(jnp.float32)
    b_txt = params["b_txt"].astype(jnp.float32)
    logit_scale = params["logit_scale"].astype(jnp.float32)

    itemsize_x = x3.dtype.itemsize
    ts = _pick_spatial_tile(spatial_p, BC, itemsize_x)
    n_blk = spatial_p // ts
    n_lane_chunks = ts // 128

    # VMEM budget: double-buffered stream + (double-buffered) resident operands
    # + accumulator + outputs; 2x headroom, capped below v7x's 64 MiB physical.
    resident_bytes = 4 * (B * HID + B * BC + BC * feat + HID * feat + 2 * feat)
    est = (2 * BC * ts * itemsize_x + 2 * resident_bytes
           + BC * 128 * 4 + 2 * 4 * (2 * B * feat + B * B))
    vmem_limit = int(min(max(2 * est, 16 << 20), 48 << 20))

    smem = pltpu.MemorySpace.SMEM

    # TODO(synk): pipeline_mode=pl.Buffered(1) on the constant-index resident
    #             inputs would free their second VMEM buffer (v7x headroom).
    grid_spec = pltpu.PrefetchScalarGridSpec(
        num_scalar_prefetch=0,
        grid=(n_blk,),
        in_specs=[
            # image volume: streamed (B*C, ts) tiles along the reduction axis
            pl.BlockSpec((BC, ts), lambda s: (0, s)),
            # token-0 slice of hidden_states: first HID lanes of each row,
            # constant block index -> resident across the grid.
            pl.BlockSpec((B, HID), lambda s: (0, 0)),
            pl.BlockSpec((B, BC), lambda s: (0, 0)),
            pl.BlockSpec((BC, feat), lambda s: (0, 0)),
            pl.BlockSpec((1, feat), lambda s: (0, 0)),
            pl.BlockSpec((HID, feat), lambda s: (0, 0)),
            pl.BlockSpec((1, feat), lambda s: (0, 0)),
            pl.BlockSpec(memory_space=smem),
        ],
        out_specs=(
            pl.BlockSpec((B, feat), lambda s: (0, 0)),
            pl.BlockSpec((B, feat), lambda s: (0, 0)),
            pl.BlockSpec((B, B), lambda s: (0, 0)),
        ),
        scratch_shapes=[pltpu.VMEM((BC, 128), jnp.float32)],
    )

    out_shape = (
        jax.ShapeDtypeStruct((B, feat), jnp.float32),  # image_features
        jax.ShapeDtypeStruct((B, feat), jnp.float32),  # text_features
        jax.ShapeDtypeStruct((B, B), jnp.float32),     # logits_per_image
    )

    flops = (BC * spatial_p                      # pooling accumulation
             + BC * 128 + BC * feat              # final lane reduce + contrib mul
             + 2 * B * BC * feat                 # image projection (sel matmul)
             + 2 * B * HID * feat                # text projection
             + 2 * B * B * feat)                 # logit matmul
    transcendentals = 2 * B + 1 + (B * B if logit_sigmoid else 0)
    bytes_accessed = (itemsize_x * BC * spatial_p + resident_bytes + 4
                      + 4 * (2 * B * feat + B * B))

    kernel = functools.partial(_clip_fused_kernel, logit_sigmoid, float(eps),
                               1.0 / float(spatial), n_lane_chunks)
    img_n, txt_n, lpi = pl.pallas_call(
        kernel,
        out_shape=out_shape,
        grid_spec=grid_spec,
        compiler_params=pltpu.CompilerParams(
            # TODO(synk): add a leading "parallel" batch axis at production B
            #             so v7x's second TensorCore is used.
            dimension_semantics=("arbitrary",),
            vmem_limit_bytes=vmem_limit),
        cost_estimate=pl.CostEstimate(flops=flops,
                                      transcendentals=transcendentals,
                                      bytes_accessed=bytes_accessed),
    )(x3, hid2d, sel, w_img_tiled, b_img, w_txt, b_txt, logit_scale)

    if return_logit:
        # Mirror the PyTorch forward: features are returned unsqueezed when
        # return_logit=True; logits_per_text = logits_per_image.T (transpose
        # done in XLA outside the kernel's serialized final step).
        return img_n[None], txt_n[None], lpi, lpi.T
    return img_n, txt_n


def init_params(key, in_channels, hidden_size, feat_dim):
    """Deterministic parameter init (shapes from the module __init__)."""
    k_img, k_txt = jax.random.split(key, 2)
    return {
        # stand-in image projection head (image encoder output dim == feat_dim)
        "w_img": (jax.random.normal(k_img, (in_channels, feat_dim),
                                    jnp.float32) * 0.1),
        "b_img": jnp.zeros((1, feat_dim), jnp.float32),
        # BertPooler_D: nn.Linear(768, configs.text_output_dim)
        "w_txt": (jax.random.normal(k_txt, (hidden_size, feat_dim),
                                    jnp.float32) * 0.02),
        "b_txt": jnp.zeros((1, feat_dim), jnp.float32),
        # logit_scale = log(1 / 0.07)
        "logit_scale": jnp.array([np.log(1.0 / 0.07)], jnp.float32),
    }


def _reference(x_img, hidden_states, params, eps=1e-8, logit_sigmoid=False):
    """Pure-JAX reference of the post-encoder math (for correctness check)."""
    B, C = x_img.shape[0], x_img.shape[1]
    pooled = x_img.astype(jnp.float32).reshape(B, C, -1).mean(axis=-1)
    img = pooled @ params["w_img"] + params["b_img"]
    txt = hidden_states[:, 0, :].astype(jnp.float32) @ params["w_txt"] + params["b_txt"]
    img = img / jnp.maximum(jnp.linalg.norm(img, axis=1, keepdims=True), eps)
    txt = txt / jnp.maximum(jnp.linalg.norm(txt, axis=1, keepdims=True), eps)
    scale = jnp.exp(jnp.clip(params["logit_scale"][0], 0.0, 4.6052))
    lpi = scale * (img @ txt.T)
    lpt = lpi.T
    if logit_sigmoid:
        lpi, lpt = jax.nn.sigmoid(lpi), jax.nn.sigmoid(lpt)
    return img, txt, lpi, lpt


if __name__ == "__main__":
    key = jax.random.PRNGKey(0)
    k_x, k_h, k_p = jax.random.split(key, 3)

    B, C, Dz, H, W = 2, 4, 8, 16, 16   # small 3D medical-style volume (NCDHW)
    S, HID, FEAT = 8, 768, 128         # BERT seq len, BERT hidden, CLIP dim

    x_img = jax.random.normal(k_x, (B, C, Dz, H, W), jnp.float32)
    hidden_states = jax.random.normal(k_h, (B, S, HID), jnp.float32)
    params = init_params(k_p, C, HID, FEAT)

    outs = clip_both_forward(x_img, hidden_states, params,
                             return_logit=True, logit_sigmoid=False)
    jax.block_until_ready(outs)
    img_f, txt_f, lpi, lpt = outs

    # shape semantics match the PyTorch forward (features unsqueezed when
    # return_logit=True; logits squeezed back to (B, B))
    assert img_f.shape == (1, B, FEAT) and txt_f.shape == (1, B, FEAT)
    assert lpi.shape == (B, B) and lpt.shape == (B, B)
    assert np.allclose(np.linalg.norm(np.asarray(img_f[0]), axis=1), 1.0, atol=1e-3)
    assert np.allclose(np.linalg.norm(np.asarray(txt_f[0]), axis=1), 1.0, atol=1e-3)
    assert np.allclose(np.asarray(lpt), np.asarray(lpi).T, atol=1e-6)

    # numeric check against a pure-JAX reference of the same math
    r_img, r_txt, r_lpi, r_lpt = _reference(x_img, hidden_states, params)
    assert np.allclose(np.asarray(img_f[0]), np.asarray(r_img), atol=2e-2, rtol=2e-2)
    assert np.allclose(np.asarray(txt_f[0]), np.asarray(r_txt), atol=2e-2, rtol=2e-2)
    assert np.allclose(np.asarray(lpi), np.asarray(r_lpi), atol=5e-2, rtol=2e-2)
    assert np.allclose(np.asarray(lpt), np.asarray(r_lpt), atol=5e-2, rtol=2e-2)
    print("KERNEL_OK")
</pallas_src>

<mosaic_0001>
module attributes {stable_mosaic.version = 11 : i64} {
  func.func @_clip_fused_kernel(%arg0: i32, %arg1: memref<8x2048xf32, #tpu.memory_space<vmem>>, %arg2: memref<2x768xf32, #tpu.memory_space<vmem>>, %arg3: memref<2x8xf32, #tpu.memory_space<vmem>>, %arg4: memref<8x128xf32, #tpu.memory_space<vmem>>, %arg5: memref<1x128xf32, #tpu.memory_space<vmem>>, %arg6: memref<768x128xf32, #tpu.memory_space<vmem>>, %arg7: memref<1x128xf32, #tpu.memory_space<vmem>>, %arg8: memref<1xf32, #tpu.memory_space<smem>>, %arg9: memref<2x128xf32, #tpu.memory_space<vmem>>, %arg10: memref<2x128xf32, #tpu.memory_space<vmem>>, %arg11: memref<2x2xf32, #tpu.memory_space<vmem>>, %arg12: memref<8x128xf32, #tpu.memory_space<vmem>>) attributes {dimension_semantics = [#tpu.dimension_semantics<arbitrary>], iteration_bounds = array<i64: 1>, scalar_prefetch = 0 : i64, scratch_operands = 1 : i64, tpu.core_type = #tpu.core_type<tc>, window_params = [{transform_indices = @transform_0, window_bounds = array<i64: 8, 2048>}, {transform_indices = @transform_1, window_bounds = array<i64: 2, 768>}, {pipeline_mode = #tpu.pipeline_mode<synchronous>, transform_indices = @transform_2, window_bounds = array<i64: 2, 8>}, {pipeline_mode = #tpu.pipeline_mode<synchronous>, transform_indices = @transform_3, window_bounds = array<i64: 8, 128>}, {pipeline_mode = #tpu.pipeline_mode<synchronous>, transform_indices = @transform_4, window_bounds = array<i64: 1, 128>}, {pipeline_mode = #tpu.pipeline_mode<synchronous>, transform_indices = @transform_5, window_bounds = array<i64: 768, 128>}, {pipeline_mode = #tpu.pipeline_mode<synchronous>, transform_indices = @transform_6, window_bounds = array<i64: 1, 128>}, {transform_indices = @transform_7, window_bounds = array<i64: 1>}, {pipeline_mode = #tpu.pipeline_mode<synchronous>, transform_indices = @transform_8, window_bounds = array<i64: 2, 128>}, {pipeline_mode = #tpu.pipeline_mode<synchronous>, transform_indices = @transform_9, window_bounds = array<i64: 2, 128>}, {pipeline_mode = #tpu.pipeline_mode<synchronous>, transform_indices = @transform_10, window_bounds = array<i64: 2, 2>}]} {
    %c0_i32 = arith.constant 0 : i32
    %0 = arith.cmpi eq, %arg0, %c0_i32 : i32
    %1 = arith.extui %0 : i1 to i32
    %c0_i32_0 = arith.constant 0 : i32
    %2 = arith.cmpi ne, %1, %c0_i32_0 : i32
    scf.if %2 {
      %cst = arith.constant 0.000000e+00 : f32
      %40 = vector.broadcast %cst : f32 to vector<8x128xf32>
      %c0_23 = arith.constant 0 : index
      %c0_24 = arith.constant 0 : index
      %41 = vector.load %arg12[%c0_23, %c0_24] : memref<8x128xf32, #tpu.memory_space<vmem>>, vector<8x128xf32>
      tpu.vector_store %arg12[%c0_23, %c0_24], %40 {strides = array<i32>} : memref<8x128xf32, #tpu.memory_space<vmem>>, vector<8x128xf32>,
    } else {
    }
    %c0 = arith.constant 0 : index
    %c0_1 = arith.constant 0 : index
    %3 = vector.load %arg12[%c0, %c0_1] : memref<8x128xf32, #tpu.memory_space<vmem>>, vector<8x128xf32>
    %c0_2 = arith.constant 0 : index
    %c0_3 = arith.constant 0 : index
    %4 = vector.load %arg1[%c0_2, %c0_3] : memref<8x2048xf32, #tpu.memory_space<vmem>>, vector<8x128xf32>
    %5 = arith.addf %3, %4 : vector<8x128xf32>
    %c0_4 = arith.constant 0 : index
    %c128 = arith.constant 128 : index
    %6 = vector.load %arg1[%c0_4, %c128] : memref<8x2048xf32, #tpu.memory_space<vmem>>, vector<8x128xf32>
    %7 = arith.addf %5, %6 : vector<8x128xf32>
    %c0_5 = arith.constant 0 : index
    %c256 = arith.constant 256 : index
    %8 = vector.load %arg1[%c0_5, %c256] : memref<8x2048xf32, #tpu.memory_space<vmem>>, vector<8x128xf32>
    %9 = arith.addf %7, %8 : vector<8x128xf32>
    %c0_6 = arith.constant 0 : index
    %c384 = arith.constant 384 : index
    %10 = vector.load %arg1[%c0_6, %c384] : memref<8x2048xf32, #tpu.memory_space<vmem>>, vector<8x128xf32>
    %11 = arith.addf %9, %10 : vector<8x128xf32>
    %c0_7 = arith.constant 0 : index
    %c512 = arith.constant 512 : index
    %12 = vector.load %arg1[%c0_7, %c512] : memref<8x2048xf32, #tpu.memory_space<vmem>>, vector<8x128xf32>
    %13 = arith.addf %11, %12 : vector<8x128xf32>
    %c0_8 = arith.constant 0 : index
    %c640 = arith.constant 640 : index
    %14 = vector.load %arg1[%c0_8, %c640] : memref<8x2048xf32, #tpu.memory_space<vmem>>, vector<8x128xf32>
    %15 = arith.addf %13, %14 : vector<8x128xf32>
    %c0_9 = arith.constant 0 : index
    %c768 = arith.constant 768 : index
    %16 = vector.load %arg1[%c0_9, %c768] : memref<8x2048xf32, #tpu.memory_space<vmem>>, vector<8x128xf32>
    %17 = arith.addf %15, %16 : vector<8x128xf32>
    %c0_10 = arith.constant 0 : index
    %c896 = arith.constant 896 : index
    %18 = vector.load %arg1[%c0_10, %c896] : memref<8x2048xf32, #tpu.memory_space<vmem>>, vector<8x128xf32>
    %19 = arith.addf %17, %18 : vector<8x128xf32>
    %c0_11 = arith.constant 0 : index
    %c1024 = arith.constant 1024 : index
    %20 = vector.load %arg1[%c0_11, %c1024] : memref<8x2048xf32, #tpu.memory_space<vmem>>, vector<8x128xf32>
    %21 = arith.addf %19, %20 : vector<8x128xf32>
    %c0_12 = arith.constant 0 : index
    %c1152 = arith.constant 1152 : index
    %22 = vector.load %arg1[%c0_12, %c1152] : memref<8x2048xf32, #tpu.memory_space<vmem>>, vector<8x128xf32>
    %23 = arith.addf %21, %22 : vector<8x128xf32>
    %c0_13 = arith.constant 0 : index
    %c1280 = arith.constant 1280 : index
    %24 = vector.load %arg1[%c0_13, %c1280] : memref<8x2048xf32, #tpu.memory_space<vmem>>, vector<8x128xf32>
    %25 = arith.addf %23, %24 : vector<8x128xf32>
    %c0_14 = arith.constant 0 : index
    %c1408 = arith.constant 1408 : index
    %26 = vector.load %arg1[%c0_14, %c1408] : memref<8x2048xf32, #tpu.memory_space<vmem>>, vector<8x128xf32>
    %27 = arith.addf %25, %26 : vector<8x128xf32>
    %c0_15 = arith.constant 0 : index
    %c1536 = arith.constant 1536 : index
    %28 = vector.load %arg1[%c0_15, %c1536] : memref<8x2048xf32, #tpu.memory_space<vmem>>, vector<8x128xf32>
    %29 = arith.addf %27, %28 : vector<8x128xf32>
    %c0_16 = arith.constant 0 : index
    %c1664 = arith.constant 1664 : index
    %30 = vector.load %arg1[%c0_16, %c1664] : memref<8x2048xf32, #tpu.memory_space<vmem>>, vector<8x128xf32>
    %31 = arith.addf %29, %30 : vector<8x128xf32>
    %c0_17 = arith.constant 0 : index
    %c1792 = arith.constant 1792 : index
    %32 = vector.load %arg1[%c0_17, %c1792] : memref<8x2048xf32, #tpu.memory_space<vmem>>, vector<8x128xf32>
    %33 = arith.addf %31, %32 : vector<8x128xf32>
    %c0_18 = arith.constant 0 : index
    %c1920 = arith.constant 1920 : index
    %34 = vector.load %arg1[%c0_18, %c1920] : memref<8x2048xf32, #tpu.memory_space<vmem>>, vector<8x128xf32>
    %35 = arith.addf %33, %34 : vector<8x128xf32>
    %c0_19 = arith.constant 0 : index
    %c0_20 = arith.constant 0 : index
    %36 = vector.load %arg12[%c0_19, %c0_20] : memref<8x128xf32, #tpu.memory_space<vmem>>, vector<8x128xf32>
    tpu.vector_store %arg12[%c0_19, %c0_20], %35 {strides = array<i32>} : memref<8x128xf32, #tpu.memory_space<vmem>>, vector<8x128xf32>,
    %c0_i32_21 = arith.constant 0 : i32
    %37 = arith.cmpi eq, %arg0, %c0_i32_21 : i32
    %38 = arith.extui %37 : i1 to i32
    %c0_i32_22 = arith.constant 0 : i32
    %39 = arith.cmpi ne, %38, %c0_i32_22 : i32
    scf.if %39 {
      %c0_23 = arith.constant 0 : index
      %c0_24 = arith.constant 0 : index
      %40 = vector.load %arg12[%c0_23, %c0_24] : memref<8x128xf32, #tpu.memory_space<vmem>>, vector<8x128xf32>
      %cst = arith.constant dense<0.000000e+00> : vector<8xf32>
      %41 = vector.multi_reduction <add>, %40, %cst [1] : vector<8x128xf32> to vector<8xf32>
      %42 = vector.shape_cast %41 : vector<8xf32> to vector<8x1xf32>
      %cst_25 = arith.constant 4.8828125E-4 : f32
      %43 = vector.broadcast %cst_25 : f32 to vector<8x1xf32>
      %44 = arith.mulf %42, %43 : vector<8x1xf32>
      %c0_26 = arith.constant 0 : index
      %c0_27 = arith.constant 0 : index
      %45 = vector.load %arg4[%c0_26, %c0_27] : memref<8x128xf32, #tpu.memory_space<vmem>>, vector<8x128xf32>
      %46 = vector.broadcast %44 : vector<8x1xf32> to vector<8x128xf32>
      %47 = arith.mulf %46, %45 : vector<8x128xf32>
      %c0_28 = arith.constant 0 : index
      %c0_29 = arith.constant 0 : index
      %48 = vector.load %arg3[%c0_28, %c0_29] : memref<2x8xf32, #tpu.memory_space<vmem>>, vector<2x8xf32>
      %cst_30 = arith.constant dense<0.000000e+00> : vector<2x128xf32>
      %49 = tpu.matmul %48, %47, %cst_30 {dimension_numbers = #tpu.dot_dimension_numbers<[1], [0], [0], [1], [0, 0, 1, 1], [], []>} : vector<2x8xf32>, vector<8x128xf32>, vector<2x128xf32> -> vector<2x128xf32>
      %c0_31 = arith.constant 0 : index
      %c0_32 = arith.constant 0 : index
      %50 = vector.load %arg5[%c0_31, %c0_32] : memref<1x128xf32, #tpu.memory_space<vmem>>, vector<1x128xf32>
      %51 = vector.broadcast %50 : vector<1x128xf32> to vector<2x128xf32>
      %52 = arith.addf %49, %51 : vector<2x128xf32>
      %c0_33 = arith.constant 0 : index
      %c0_34 = arith.constant 0 : index
      %53 = vector.load %arg2[%c0_33, %c0_34] : memref<2x768xf32, #tpu.memory_space<vmem>>, vector<2x768xf32>
      %c0_35 = arith.constant 0 : index
      %c0_36 = arith.constant 0 : index
      %54 = vector.load %arg6[%c0_35, %c0_36] : memref<768x128xf32, #tpu.memory_space<vmem>>, vector<768x128xf32>
      %cst_37 = arith.constant dense<0.000000e+00> : vector<2x128xf32>
      %55 = tpu.matmul %53, %54, %cst_37 {dimension_numbers = #tpu.dot_dimension_numbers<[1], [0], [0], [1], [0, 0, 1, 1], [], []>} : vector<2x768xf32>, vector<768x128xf32>, vector<2x128xf32> -> vector<2x128xf32>
      %c0_38 = arith.constant 0 : index
      %c0_39 = arith.constant 0 : index
      %56 = vector.load %arg7[%c0_38, %c0_39] : memref<1x128xf32, #tpu.memory_space<vmem>>, vector<1x128xf32>
      %57 = vector.broadcast %56 : vector<1x128xf32> to vector<2x128xf32>
      %58 = arith.addf %55, %57 : vector<2x128xf32>
      %59 = arith.mulf %52, %52 : vector<2x128xf32>
      %cst_40 = arith.constant dense<0.000000e+00> : vector<2xf32>
      %60 = vector.multi_reduction <add>, %59, %cst_40 [1] : vector<2x128xf32> to vector<2xf32>
      %61 = vector.shape_cast %60 : vector<2xf32> to vector<2x1xf32>
      %cst_41 = arith.constant 1.000000e-16 : f32
      %62 = vector.broadcast %cst_41 : f32 to vector<2x1xf32>
      %63 = arith.maximumf %61, %62 : vector<2x1xf32>
      %64 = math.rsqrt %63 : vector<2x1xf32>
      %65 = vector.broadcast %64 : vector<2x1xf32> to vector<2x128xf32>
      %66 = arith.mulf %52, %65 : vector<2x128xf32>
      %67 = arith.mulf %58, %58 : vector<2x128xf32>
      %cst_42 = arith.constant dense<0.000000e+00> : vector<2xf32>
      %68 = vector.multi_reduction <add>, %67, %cst_42 [1] : vector<2x128xf32> to vector<2xf32>
      %69 = vector.shape_cast %68 : vector<2xf32> to vector<2x1xf32>
      %cst_43 = arith.constant 1.000000e-16 : f32
      %70 = vector.broadcast %cst_43 : f32 to vector<2x1xf32>
      %71 = arith.maximumf %69, %70 : vector<2x1xf32>
      %72 = math.rsqrt %71 : vector<2x1xf32>
      %73 = vector.broadcast %72 : vector<2x1xf32> to vector<2x128xf32>
      %74 = arith.mulf %58, %73 : vector<2x128xf32>
      %c0_44 = arith.constant 0 : index
      %c0_45 = arith.constant 0 : index
      %75 = vector.load %arg9[%c0_44, %c0_45] : memref<2x128xf32, #tpu.memory_space<vmem>>, vector<2x128xf32>
      tpu.vector_store %arg9[%c0_44, %c0_45], %66 {strides = array<i32>} : memref<2x128xf32, #tpu.memory_space<vmem>>, vector<2x128xf32>,
      %c0_46 = arith.constant 0 : index
      %c0_47 = arith.constant 0 : index
      %76 = vector.load %arg10[%c0_46, %c0_47] : memref<2x128xf32, #tpu.memory_space<vmem>>, vector<2x128xf32>
      tpu.vector_store %arg10[%c0_46, %c0_47], %74 {strides = array<i32>} : memref<2x128xf32, #tpu.memory_space<vmem>>, vector<2x128xf32>,
      %c0_48 = arith.constant 0 : index
      %77 = memref.load %arg8[%c0_48] : memref<1xf32, #tpu.memory_space<smem>>
      %cst_49 = arith.constant 0.000000e+00 : f32
      %cst_50 = arith.constant 4.605200e+00 : f32
      %78 = arith.maximumf %cst_49, %77 : f32
      %79 = arith.minimumf %cst_50, %78 : f32
      %80 = math.exp %79 : f32
      %cst_51 = arith.constant dense<0.000000e+00> : vector<2x2xf32>
      %81 = tpu.matmul %66, %74, %cst_51 {dimension_numbers = #tpu.dot_dimension_numbers<[1], [1], [0], [0], [0, 0, 1, 0], [], []>} : vector<2x128xf32>, vector<2x128xf32>, vector<2x2xf32> -> vector<2x2xf32>
      %82 = vector.broadcast %80 : f32 to vector<2x2xf32>
      %83 = arith.mulf %82, %81 : vector<2x2xf32>
      %c0_52 = arith.constant 0 : index
      %c0_53 = arith.constant 0 : index
      %84 = vector.load %arg11[%c0_52, %c0_53] : memref<2x2xf32, #tpu.memory_space<vmem>>, vector<2x2xf32>
      tpu.vector_store %arg11[%c0_52, %c0_53], %83 {strides = array<i32>} : memref<2x2xf32, #tpu.memory_space<vmem>>, vector<2x2xf32>,
    } else {
    }
    return
  }
  func.func @transform_0(%arg0: i32) -> (i32, i32) {
    %c0_i32 = arith.constant 0 : i32
    %c0_i32_0 = arith.constant 0 : i32
    return %c0_i32, %arg0 : i32, i32
  }
  func.func @transform_1(%arg0: i32) -> (i32, i32) {
    %c0_i32 = arith.constant 0 : i32
    %c0_i32_0 = arith.constant 0 : i32
    %c0_i32_1 = arith.constant 0 : i32
    return %c0_i32, %c0_i32_0 : i32, i32
  }
  func.func @transform_2(%arg0: i32) -> (i32, i32) {
    %c0_i32 = arith.constant 0 : i32
    %c0_i32_0 = arith.constant 0 : i32
    %c0_i32_1 = arith.constant 0 : i32
    return %c0_i32, %c0_i32_0 : i32, i32
  }
  func.func @transform_3(%arg0: i32) -> (i32, i32) {
    %c0_i32 = arith.constant 0 : i32
    %c0_i32_0 = arith.constant 0 : i32
    %c0_i32_1 = arith.constant 0 : i32
    return %c0_i32, %c0_i32_0 : i32, i32
  }
  func.func @transform_4(%arg0: i32) -> (i32, i32) {
    %c0_i32 = arith.constant 0 : i32
    %c0_i32_0 = arith.constant 0 : i32
    %c0_i32_1 = arith.constant 0 : i32
    return %c0_i32, %c0_i32_0 : i32, i32
  }
  func.func @transform_5(%arg0: i32) -> (i32, i32) {
    %c0_i32 = arith.constant 0 : i32
    %c0_i32_0 = arith.constant 0 : i32
    %c0_i32_1 = arith.constant 0 : i32
    return %c0_i32, %c0_i32_0 : i32, i32
  }
  func.func @transform_6(%arg0: i32) -> (i32, i32) {
    %c0_i32 = arith.constant 0 : i32
    %c0_i32_0 = arith.constant 0 : i32
    %c0_i32_1 = arith.constant 0 : i32
    return %c0_i32, %c0_i32_0 : i32, i32
  }
  func.func @transform_7(%arg0: i32) -> i32 {
    %c0_i32 = arith.constant 0 : i32
    %c0_i32_0 = arith.constant 0 : i32
    return %c0_i32 : i32
  }
  func.func @transform_8(%arg0: i32) -> (i32, i32) {
    %c0_i32 = arith.constant 0 : i32
    %c0_i32_0 = arith.constant 0 : i32
    %c0_i32_1 = arith.constant 0 : i32
    return %c0_i32, %c0_i32_0 : i32, i32
  }
  func.func @transform_9(%arg0: i32) -> (i32, i32) {
    %c0_i32 = arith.constant 0 : i32
    %c0_i32_0 = arith.constant 0 : i32
    %c0_i32_1 = arith.constant 0 : i32
    return %c0_i32, %c0_i32_0 : i32, i32
  }
  func.func @transform_10(%arg0: i32) -> (i32, i32) {
    %c0_i32 = arith.constant 0 : i32
    %c0_i32_0 = arith.constant 0 : i32
    %c0_i32_1 = arith.constant 0 : i32
    return %c0_i32, %c0_i32_0 : i32, i32
  }
}

</mosaic_0001>

<bundles_post_ra>
// kernel: tpu_custom_call.1
= control target key start
LH: loop header
LB: loop body
LE: loop exit
PB: predicated region body
PF: predicated region fallthrough
CT: control target
= control target key end

     0   :  { %17 = vsyncpa [#allocation5], 0  ;;  %s825_s0 = inlined_call_operand.hbm [shape: f32[8,2048], index: 0, kind: input, shape index: {}]   ;;  %s826_s1 = inlined_call_operand.hbm [shape: f32[2,6144], index: 1, kind: input, shape index: {}]   ;;  %s827_s2 = inlined_call_operand.vmem [shape: f32[2,8], index: 2, kind: input, shape index: {}]   ;;  %s828_s3 = inlined_call_operand.hbm [shape: f32[8,128], index: 3, kind: input, shape index: {}]   ;;  %s829_s4 = inlined_call_operand.vmem [shape: f32[1,128], index: 4, kind: input, shape index: {}]   ;;  %s830_s5 = inlined_call_operand.hbm [shape: f32[768,128], index: 5, kind: input, shape index: {}]   ;;  %s831_s6 = inlined_call_operand.vmem [shape: f32[1,128], index: 6, kind: input, shape index: {}]   ;;  %s832_s7 = inlined_call_operand.<no memory space> [shape: f32[1], index: 7, kind: input, shape index: {}]   ;;  %s833_s8 = inlined_call_operand.hbm [shape: f32[2,128], index: 8, kind: output, shape index: {0}]   ;;  %s834_s9 = inlined_call_operand.hbm [shape: f32[2,128], index: 9, kind: output, shape index: {1}]   ;;  %s835_s10 = inlined_call_operand.hbm [shape: f32[2,2], index: 10, kind: output, shape index: {2}]  }
   0x1   :  { %18 = vsyncpa [#allocation8], 0 }
   0x2   :  { %19 = vsyncpa [#allocation11], 0 }
   0x3   :  { %20 = vsyncpa [#allocation6], 0  ;;  %s38_s15 = sshll.u32 %s826_s1, 4  ;;  %s39_s15 = int_to_ptr.hbm [resolvable:$true] %s38_s15 }
   0x4   :  { %21 = vsyncpa [#allocation14], 0  ;;  %s724_s16 = smov [#allocation7]   ;;  %s27_s20 = sshll.u32 %s825_s0, 4  ;;  %s28_s20 = int_to_ptr.hbm [resolvable:$true] %s27_s20 }
   0x5   :  { %s40_s17 = sshll.u32 %s724_s16, 4  ;;  %s725_s21 = smov [#allocation4]   ;;  %s41_s17 = int_to_ptr.vmem [resolvable:$true] %s40_s17 }
   0x6   :  { %43 = dma.hbm_to_vmem [thread:$0]  %s39_s15, 192, %s41_s17, [#allocation8]  }
   0x7   :  { %s29_s22 = sshll.u32 %s725_s21, 4  ;;  %s51_s25 = sshll.u32 %s828_s3, 4  ;;  %s30_s22 = int_to_ptr.vmem [resolvable:$true] %s29_s22  ;;  %s52_s25 = int_to_ptr.hbm [resolvable:$true] %s51_s25 }
   0x8   :  { %32 = dma.hbm_to_vmem [thread:$0]  %s28_s20, 2048, %s30_s22, [#allocation5]  }
   0x9   :  { %s63_s27 = sshll.u32 %s830_s5, 4  ;;  %s726_s28 = smov [#allocation9]   ;;  %s64_s27 = int_to_ptr.hbm [resolvable:$true] %s63_s27 }
   0xa   :  { %s53_s29 = sshll.u32 %s726_s28, 4  ;;  %s727_s0 = smov [#allocation10]   ;;  %s54_s29 = int_to_ptr.vmem [resolvable:$true] %s53_s29 }
   0xb   :  { %56 = dma.hbm_to_vmem [thread:$0]  %s52_s25, 128, %s54_s29, [#allocation8]  }
   0xc   :  { %s65_s30 = sshll.u32 %s727_s0, 4  ;;  %s728_s11 = smov 128   ;;  %s66_s30 = int_to_ptr.vmem [resolvable:$true] %s65_s30 }
   0xd   :  { %s729_s12 = smov 8  }
   0xe   :  { %71 = dma.hbm_to_vmem [thread:$0]  %s64_s27, 12288, %s66_s30, [#allocation11], %s728_s11, %s728_s11, %s729_s12  }
   0xf   :  { %714 = dma.done.wait [#allocation5], 2048  }
  0x10   :  { %715 = vsyncadd [#allocation5], 4294965248 }
  0x11   :  { %716 = dma.done.wait [#allocation8], 320  }
  0x12   :  { %717 = vsyncadd [#allocation8], 4294966976 }
  0x13   :  { %718 = dma.done.wait [#allocation11], 12288  }
  0x14   :  { %719 = vsyncadd [#allocation11], 4294955008  ;;  %v98_v0 = vld [vmem:[#allocation4] sm:$0xff]  ;;  %v100_v1 = vld [vmem:[#allocation4 + $0x8] sm:$0xff]  ;;  %vm145_vm0 = vcmask 64512   ;;  %vm409_vm1 = vcmask 1041408  }
  0x15   :  { %v102_v2 = vld [vmem:[#allocation4 + $0x10] sm:$0xff]  ;;  %v101_v3 = vadd.f32 %v100_v1, %v98_v0  ;;  %v104_v4 = vld [vmem:[#allocation4 + $0x18] sm:$0xff]  ;;  %v106_v6 = vld [vmem:[#allocation4 + $0x20] sm:$0xff]  ;;  %s731_s18 = smov 4.6052   ;;  %s492_s23 = sshll.u32 %s834_s9, 4  ;;  %s493_s23 = int_to_ptr.hbm [resolvable:$true] %s492_s23 }
  0x16   :  { %v202_v8 = vld [vmem:[#allocation10 + $0xf8] sm:$0xff]  ;;  %v201_v9 = vld [vmem:[#allocation10 + $0xf0] sm:$0xff]  ;;  %v200_v14 = vld [vmem:[#allocation10 + $0xe8] sm:$0xff]  ;;  %s481_s1 = sshll.u32 %s833_s8, 4  ;;  %s733_s26 = smov [#allocation12]   ;;  %vm472_vm8 = vcmask 9216   ;;  %s482_s1 = int_to_ptr.hbm [resolvable:$true] %s481_s1 }
  0x17   :  { %v103_v5 = vadd.f32 %v102_v2, %v101_v3  ;;  %v108_v10 = vld [vmem:[#allocation4 + $0x28] sm:$0xff]  ;;  %308 = vmatpush.msra.mxu2 %v202_v8  ;;  %v110_v15 = vld [vmem:[#allocation4 + $0x30] sm:$0xff]  ;;  %v184_v16 = vld [vmem:[#allocation10 + $0x68] sm:$0xff]  ;;  %s479_s27 = sshll.u32 %s733_s26, 4  ;;  %s734_s29 = smov [#allocation15]   ;;  %s480_s27 = int_to_ptr.vmem [resolvable:$true] %s479_s27 }
  0x18   :  { %v186_v11 = vld [vmem:[#allocation10 + $0x78] sm:$0xff]  ;;  %v185_v12 = vld [vmem:[#allocation10 + $0x70] sm:$0xff]  ;;  %v199_v18 = vld [vmem:[#allocation10 + $0xe0] sm:$0xff]  ;;  %s501_s0 = sshll.u32 %s734_s29, 4  ;;  %s503_s9 = sshll.u32 %s835_s10, 4  ;;  %s502_s0 = int_to_ptr.vmem [resolvable:$true] %s501_s0  ;;  %s504_s9 = int_to_ptr.hbm [resolvable:$true] %s503_s9 }
  0x19   :  { %v105_v7 = vadd.f32 %v104_v4, %v103_v5  ;;  %288 = vmatpush.msra.mxu1 %v186_v11  ;;  %309 = vmatpush.msra.mxu2 %v201_v9  ;;  %v112_v19 = vld [vmem:[#allocation4 + $0x38] sm:$0xff]  ;;  %v198_v22 = vld [vmem:[#allocation10 + $0xd8] sm:$0xff]  ;;  %v114_v23 = vld [vmem:[#allocation4 + $0x40] sm:$0xff] }
  0x1a   :  { %v183_v20 = vld [vmem:[#allocation10 + $0x60] sm:$0xff]  ;;  %v182_v24 = vld [vmem:[#allocation10 + $0x58] sm:$0xff]  ;;  %v197_v27 = vld [vmem:[#allocation10 + $0xd0] sm:$0xff] }
  0x1b   :  { %v107_v13 = vadd.f32 %v106_v6, %v105_v7  ;;  %289 = vmatpush.msra.mxu1 %v185_v12  ;;  %310 = vmatpush.msra.mxu2 %v200_v14  ;;  %v116_v26 = vld [vmem:[#allocation4 + $0x48] sm:$0xff]  ;;  %v196_v32 = vld [vmem:[#allocation10 + $0xc8] sm:$0xff]  ;;  %v118_v33 = vld [vmem:[#allocation4 + $0x50] sm:$0xff] }
  0x1c   :  { %v218_v28 = vld [vmem:[#allocation10 + $0x178] sm:$0xff]  ;;  %v181_v29 = vld [vmem:[#allocation10 + $0x50] sm:$0xff]  ;;  %v180_v34 = vld [vmem:[#allocation10 + $0x48] sm:$0xff] }
  0x1d   :  { %v109_v17 = vadd.f32 %v108_v10, %v107_v13  ;;  %290 = vmatpush.msra.mxu1 %v184_v16  ;;  %311 = vmatpush.msra.mxu2 %v199_v18  ;;  %v217_v30 = vld [vmem:[#allocation10 + $0x170] sm:$0xff]  ;;  %v195_v36 = vld [vmem:[#allocation10 + $0xc0] sm:$0xff]  ;;  %v194_v40 = vld [vmem:[#allocation10 + $0xb8] sm:$0xff] }
  0x1e   :  { %328 = vmatpush.msra.mxu3 %v218_v28  ;;  %v120_v37 = vld [vmem:[#allocation4 + $0x58] sm:$0xff]  ;;  %v122_v41 = vld [vmem:[#allocation4 + $0x60] sm:$0xff]  ;;  %v178_v42 = vld [vmem:[#allocation10 + $0x38] sm:$0xff] }
  0x1f   :  { %v111_v21 = vadd.f32 %v110_v15, %v109_v17  ;;  %291 = vmatpush.msra.mxu1 %v183_v20  ;;  %312 = vmatpush.msra.mxu2 %v198_v22  ;;  %v179_v38 = vld [vmem:[#allocation10 + $0x40] sm:$0xff]  ;;  %v193_v44 = vld [vmem:[#allocation10 + $0xb0] sm:$0xff]  ;;  %v192_v48 = vld [vmem:[#allocation10 + $0xa8] sm:$0xff] }
  0x20   :  { %329 = vmatpush.msra.mxu3 %v217_v30  ;;  %v124_v45 = vld [vmem:[#allocation4 + $0x68] sm:$0xff]  ;;  %v126_v49 = vld [vmem:[#allocation4 + $0x70] sm:$0xff]  ;;  %v176_v50 = vld [vmem:[#allocation10 + $0x28] sm:$0xff] }
  0x21   :  { %v113_v25 = vadd.f32 %v112_v19, %v111_v21  ;;  %292 = vmatpush.msra.mxu1 %v182_v24  ;;  %313 = vmatpush.msra.mxu2 %v197_v27  ;;  %v177_v46 = vld [vmem:[#allocation10 + $0x30] sm:$0xff]  ;;  %v191_v52 = vld [vmem:[#allocation10 + $0xa0] sm:$0xff]  ;;  %v190_v56 = vld [vmem:[#allocation10 + $0x98] sm:$0xff] }
  0x22   :  { %v128_v53 = vld [vmem:[#allocation4 + $0x78] sm:$0xff]  ;;  %v189_v58 = vld [vmem:[#allocation10 + $0x90] sm:$0xff]  ;;  %v174_v59 = vld [vmem:[#allocation10 + $0x18] sm:$0xff] }
  0x23   :  { %v115_v31 = vadd.f32 %v114_v23, %v113_v25  ;;  %293 = vmatpush.msra.mxu1 %v181_v29  ;;  %314 = vmatpush.msra.mxu2 %v196_v32  ;;  %v175_v54 = vld [vmem:[#allocation10 + $0x20] sm:$0xff]  ;;  %v188_v60 = vld [vmem:[#allocation10 + $0x88] sm:$0xff]  ;;  %v173_v62 = vld [vmem:[#allocation10 + $0x10] sm:$0xff] }
  0x24   :  { %v216_v61 = vld [vmem:[#allocation10 + $0x168] sm:$0xff]  ;;  %v187_v63 = vld [vmem:[#allocation10 + $0x80] sm:$0xff]  ;;  %v266_v1 = vld [vmem:[#allocation10 + $0x2f8] sm:$0xff] }
  0x25   :  { %v117_v35 = vadd.f32 %v116_v26, %v115_v31  ;;  %294 = vmatpush.msra.mxu1 %v180_v34  ;;  %315 = vmatpush.msra.mxu2 %v195_v36  ;;  %v215_v0 = vld [vmem:[#allocation10 + $0x160] sm:$0xff]  ;;  %v172_v2 = vld [vmem:[#allocation10 + $0x8] sm:$0xff]  ;;  %v214_v3 = vld [vmem:[#allocation10 + $0x158] sm:$0xff] }
  0x26   :  { %330 = vmatpush.msra.mxu3 %v216_v61  ;;  %v265_v4 = vld [vmem:[#allocation10 + $0x2f0] sm:$0xff]  ;;  %v171_v5 = vld [vmem:[#allocation10] sm:$0xff]  ;;  %v250_v7 = vld [vmem:[#allocation10 + $0x278] sm:$0xff] }
  0x27   :  { %v119_v39 = vadd.f32 %v118_v33, %v117_v35  ;;  %295 = vmatpush.msra.mxu1 %v179_v38  ;;  %316 = vmatpush.msra.mxu2 %v194_v40  ;;  %v213_v6 = vld [vmem:[#allocation10 + $0x150] sm:$0xff]  ;;  %v264_v8 = vld [vmem:[#allocation10 + $0x2e8] sm:$0xff]  ;;  %v263_v11 = vld [vmem:[#allocation10 + $0x2e0] sm:$0xff] }
  0x28   :  { %331 = vmatpush.msra.mxu3 %v215_v0  ;;  %v212_v9 = vld [vmem:[#allocation10 + $0x148] sm:$0xff]  ;;  %v249_v10 = vld [vmem:[#allocation10 + $0x270] sm:$0xff]  ;;  %v211_v12 = vld [vmem:[#allocation10 + $0x140] sm:$0xff] }
  0x29   :  { %v121_v43 = vadd.f32 %v120_v37, %v119_v39  ;;  %296 = vmatpush.msra.mxu1 %v178_v42  ;;  %317 = vmatpush.msra.mxu2 %v193_v44  ;;  %v248_v13 = vld [vmem:[#allocation10 + $0x268] sm:$0xff]  ;;  %v262_v14 = vld [vmem:[#allocation10 + $0x2d8] sm:$0xff]  ;;  %v247_v16 = vld [vmem:[#allocation10 + $0x260] sm:$0xff] }
  0x2a   :  { %332 = vmatpush.msra.mxu3 %v214_v3  ;;  %v210_v15 = vld [vmem:[#allocation10 + $0x138] sm:$0xff]  ;;  %v261_v17 = vld [vmem:[#allocation10 + $0x2d0] sm:$0xff]  ;;  %v260_v20 = vld [vmem:[#allocation10 + $0x2c8] sm:$0xff] }
  0x2b   :  { %v123_v47 = vadd.f32 %v122_v41, %v121_v43  ;;  %297 = vmatpush.msra.mxu1 %v177_v46  ;;  %318 = vmatpush.msra.mxu2 %v192_v48  ;;  %v209_v18 = vld [vmem:[#allocation10 + $0x130] sm:$0xff]  ;;  %v246_v19 = vld [vmem:[#allocation10 + $0x258] sm:$0xff]  ;;  %v208_v21 = vld [vmem:[#allocation10 + $0x128] sm:$0xff] }
  0x2c   :  { %333 = vmatpush.msra.mxu3 %v213_v6  ;;  %v245_v22 = vld [vmem:[#allocation10 + $0x250] sm:$0xff]  ;;  %v259_v23 = vld [vmem:[#allocation10 + $0x2c0] sm:$0xff]  ;;  %v244_v26 = vld [vmem:[#allocation10 + $0x248] sm:$0xff] }
  0x2d   :  { %v125_v51 = vadd.f32 %v124_v45, %v123_v47  ;;  %298 = vmatpush.msra.mxu1 %v176_v50  ;;  %319 = vmatpush.msra.mxu2 %v191_v52  ;;  %v207_v24 = vld [vmem:[#allocation10 + $0x120] sm:$0xff]  ;;  %v169_v25 = vld [vmem:[#allocation7] sm:$0xff]  ;;  %v258_v27 = vld [vmem:[#allocation10 + $0x2b8] sm:$0xff] }
  0x2e   :  { %334 = vmatpush.msra.mxu3 %v212_v9  ;;  %273 = vst [vmem:[#allocation1] ss:$4 sm:$0xff] %v169_v25  ;;  %v206_v28 = vld [vmem:[#allocation10 + $0x118] sm:$0xff]  ;;  %v243_v29 = vld [vmem:[#allocation10 + $0x240] sm:$0xff]  ;;  %v257_v30 = vld [vmem:[#allocation10 + $0x2b0] sm:$0xff] }
  0x2f   :  { %v127_v55 = vadd.f32 %v126_v49, %v125_v51  ;;  %299 = vmatpush.msra.mxu1 %v175_v54  ;;  %320 = vmatpush.msra.mxu2 %v190_v56  ;;  %v205_v31 = vld [vmem:[#allocation10 + $0x110] sm:$0xff]  ;;  %v242_v32 = vld [vmem:[#allocation10 + $0x238] sm:$0xff]  ;;  %v256_v33 = vld [vmem:[#allocation10 + $0x2a8] sm:$0xff] }
  0x30   :  { %335 = vmatpush.msra.mxu3 %v211_v12  ;;  %v204_v34 = vld [vmem:[#allocation10 + $0x108] sm:$0xff]  ;;  %v241_v35 = vld [vmem:[#allocation10 + $0x230] sm:$0xff]  ;;  %v255_v36 = vld [vmem:[#allocation10 + $0x2a0] sm:$0xff] }
  0x31   :  { %v129_v57 = vadd.f32 %v128_v53, %v127_v55  ;;  %321 = vmatpush.msra.mxu2 %v189_v58  ;;  %300 = vmatpush.msra.mxu1 %v174_v59  ;;  %v203_v38 = vld [vmem:[#allocation10 + $0x100] sm:$0xff]  ;;  %v240_v39 = vld [vmem:[#allocation10 + $0x228] sm:$0xff]  ;;  %v254_v40 = vld [vmem:[#allocation10 + $0x298] sm:$0xff] }
  0x32   :  { %336 = vmatpush.msra.mxu3 %v210_v15  ;;  %v170_v41 = vld [vmem:[#allocation7 + $0x8] sm:$0xf]  ;;  %v239_v43 = vld [vmem:[#allocation10 + $0x220] sm:$0xff]  ;;  %v138_v47 = vld [vmem:[#allocation9] sm:$0xff] }
  0x33   :  { %135 = vadd.xlane.f32.xlu0 %v129_v57  ;;  %322 = vmatpush.msra.mxu2 %v188_v60  ;;  %275 = vst [vmem:[#allocation1 + $0x20] ss:$4 sm:$0xff] %v170_v41  ;;  %v253_v44 = vld [vmem:[#allocation10 + $0x290] sm:$0xff]  ;;  %v238_v48 = vld [vmem:[#allocation10 + $0x218] sm:$0xff]  ;;  %v252_v49 = vld [vmem:[#allocation10 + $0x288] sm:$0xff] }
  0x34   :  { %301 = vmatpush.msra.mxu1 %v173_v62  ;;  %337 = vmatpush.msra.mxu3 %v209_v18  ;;  %v237_v51 = vld [vmem:[#allocation10 + $0x210] sm:$0xff]  ;;  %v251_v52 = vld [vmem:[#allocation10 + $0x280] sm:$0xff]  ;;  %v234_v55 = vld [vmem:[#allocation10 + $0x1f8] sm:$0xff] }
  0x35   :  { %323 = vmatpush.msra.mxu2 %v187_v63  ;;  %v277_v37 = vld.sshfl [vmem:[#allocation1 + $0x8] sm:$0xff pattern:$0x73625140]  ;;  %v278_v42 = vld.sshfl [vmem:[#allocation1 + $0x10] sm:$0xff pattern:$0x73625140] }
  0x36   :  { %302 = vmatpush.msra.mxu1 %v172_v2  ;;  %338 = vmatpush.msra.mxu3 %v208_v21  ;;  %v276_v45 = vld.sshfl [vmem:[#allocation1] sm:$0xff pattern:$0x73625140]  ;;  %v233_v58 = vld [vmem:[#allocation10 + $0x1f0] sm:$0xff]  ;;  %v230_v63 = vld [vmem:[#allocation10 + $0x1d8] sm:$0xff] }
  0x37   :  { %388 = vmatpush.msrb.mxu2 %v266_v1  ;;  %v140_v54 = vld [vmem:[%s827_s2] sm:$0x3]  ;;  %v236_v57 = vld [vmem:[#allocation10 + $0x208] sm:$0xff]  ;;  %v229_v0 = vld [vmem:[#allocation10 + $0x1d0] sm:$0xff] }
  0x38   :  { %303 = vmatpush.msra.mxu1 %v171_v5  ;;  %339 = vmatpush.msra.mxu3 %v207_v24  ;;  %v235_v59 = vld [vmem:[#allocation10 + $0x200] sm:$0xff]  ;;  %v232_v61 = vld [vmem:[#allocation10 + $0x1e8] sm:$0xff]  ;;  %v226_v3 = vld [vmem:[#allocation10 + $0x1b8] sm:$0xff] }
  0x39   :  { %389 = vmatpush.msrb.mxu2 %v265_v4  ;;  %304 = vmatmul.f32.vlgmr.msra.gmra.mxu1 %v276_v45  ;;  %v231_v62 = vld [vmem:[#allocation10 + $0x1e0] sm:$0xff]  ;;  %v228_v1 = vld [vmem:[#allocation10 + $0x1c8] sm:$0xff]  ;;  %v225_v4 = vld [vmem:[#allocation10 + $0x1b0] sm:$0xff] }
  0x3a   :  { %368 = vmatpush.msrb.mxu1 %v250_v7  ;;  %340 = vmatpush.msra.mxu3 %v206_v28  ;;  %v281_v56 = vld.sshfl [vmem:[#allocation1 + $0x28] sm:$0xff pattern:$0x73625140]  ;;  %v280_v60 = vld.sshfl [vmem:[#allocation1 + $0x20] sm:$0xff pattern:$0x73625140] }
  0x3b   :  { %390 = vmatpush.msrb.mxu2 %v264_v8  ;;  %v227_v2 = vld [vmem:[#allocation10 + $0x1c0] sm:$0xff]  ;;  %v224_v5 = vld [vmem:[#allocation10 + $0x1a8] sm:$0xff]  ;;  %v222_v7 = vld [vmem:[#allocation10 + $0x198] sm:$0xff] }
  0x3c   :  { %369 = vmatpush.msrb.mxu1 %v249_v10  ;;  %341 = vmatpush.msra.mxu3 %v205_v31  ;;  %v223_v6 = vld [vmem:[#allocation10 + $0x1a0] sm:$0xff]  ;;  %v221_v8 = vld [vmem:[#allocation10 + $0x190] sm:$0xff]  ;;  %v220_v9 = vld [vmem:[#allocation10 + $0x188] sm:$0xff] }
  0x3d   :  { %391 = vmatpush.msrb.mxu2 %v263_v11  ;;  %v219_v10 = vld [vmem:[#allocation10 + $0x180] sm:$0xff] }
  0x3e   :  { %370 = vmatpush.msrb.mxu1 %v248_v13  ;;  %342 = vmatpush.msra.mxu3 %v204_v34  ;;  %v279_v11 = vld.sshfl [vmem:[#allocation1 + $0x18] sm:$0xff pattern:$0x73625140]  ;;  %v538_v12 = vld [vmem:[%s829_s4] ss:$0 sm:$0xff]  ;;  %s730_s4 = smov 0.0  }
  0x3f   :  { %392 = vmatpush.msrb.mxu2 %v262_v14  ;;  %s444_s17 = smax.f32 %s730_s4, %s832_s7  ;;  %s732_s7 = smov [#allocation13]  }
  0x40   :  { %371 = vmatpush.msrb.mxu1 %v247_v16  ;;  %324 = vmatmul.f32.vlgmr.msra.gmra.mxu2 %v277_v37  ;;  %s445_s19 = smin.f32 %s731_s18, %s444_s17  ;;  %s490_s20 = sshll.u32 %s732_s7, 4  ;;  %s491_s20 = int_to_ptr.vmem [resolvable:$true] %s490_s20 }
  0x41   :  { %393 = vmatpush.msrb.mxu2 %v261_v17  ;;  %343 = vmatpush.msra.mxu3 %v203_v38  ;;  %v539_v17 = vld [vmem:[%s831_s6] ss:$0 sm:$0xff] }
  0x42   :  { %372 = vmatpush.msrb.mxu1 %v246_v19  ;;  %344 = vmatmul.f32.vlgmr.msra.gmra.mxu3 %v278_v42  ;;  %v446_v42 = vstv %s445_s19 }
  0x43   :  { %394 = vmatpush.msrb.mxu2 %v260_v20 }
  0x44   :  { %373 = vmatpush.msrb.mxu1 %v245_v22 }
  0x45   :  { %395 = vmatpush.msrb.mxu2 %v259_v23 }
  0x46   :  { %374 = vmatpush.msrb.mxu1 %v244_v26 }
  0x47   :  { %396 = vmatpush.msrb.mxu2 %v258_v27 }
  0x48   :  { %375 = vmatpush.msrb.mxu1 %v243_v29 }
  0x49   :  { %397 = vmatpush.msrb.mxu2 %v257_v30 }
  0x4a   :  { %376 = vmatpush.msrb.mxu1 %v242_v32 }
  0x4b   :  { %398 = vmatpush.msrb.mxu2 %v256_v33 }
  0x4c   :  { %377 = vmatpush.msrb.mxu1 %v241_v35 }
  0x4d   :  { %399 = vmatpush.msrb.mxu2 %v255_v36 }
  0x4e   :  { %378 = vmatpush.msrb.mxu1 %v240_v39 }
  0x4f   :  { %400 = vmatpush.msrb.mxu2 %v254_v40 }
  0x50   :  { %379 = vmatpush.msrb.mxu1 %v239_v43  ;;  %v447_v43 = vmul.f32 1.442695, %v446_v42 }
  0x51   :  { %401 = vmatpush.msrb.mxu2 %v253_v44 }
  0x52   :  { %380 = vmatpush.msrb.mxu1 %v238_v48 }
  0x53   :  { %402 = vmatpush.msrb.mxu2 %v252_v49 }
  0x54   :  { %381 = vmatpush.msrb.mxu1 %v237_v51 }
  0x55   :  { %403 = vmatpush.msrb.mxu2 %v251_v52 }
  0x56   :  { %404 = vmatmul.f32.vlgmr.msrb.gmra.mxu2 %v281_v56  ;;  %382 = vmatpush.msrb.mxu1 %v236_v57 }
  0x58   :  { %383 = vmatpush.msrb.mxu1 %v235_v59 }
  0x59   :  { %384 = vmatmul.f32.vlgmr.msrb.gmra.mxu1 %v280_v60 }
  0xa6   :  { %v136_v46 = vpop.xlane.xlu0 %135 }
  0xa7   :  { %v137_v50 = vmul.f32 0.00048828125, %v136_v46 }
  0xa9   :  { %v139_v53 = vmul.f32 %v138_v47, %v137_v50 }
  0xab   :  { %164 = vmatpush.msra.mxu0 %v139_v53 }
  0xac   :  { %524 = vmatmul.msk.f32.vlgmr.msra.gmra.mxu0 %vm145_vm0, %v140_v54 }
  0xad   :  { %348 = vmatpush.msrb.mxu0 %v234_v55 }
  0xaf   :  { %349 = vmatpush.msrb.mxu0 %v233_v58 }
  0xb1   :  { %350 = vmatpush.msrb.mxu0 %v232_v61 }
  0xb3   :  { %351 = vmatpush.msrb.mxu0 %v231_v62 }
  0xb5   :  { %352 = vmatpush.msrb.mxu0 %v230_v63 }
  0xb6   :  { %v305_v18 = vpop.f32.mrf.mxu1 }
  0xb7   :  { %353 = vmatpush.msrb.mxu0 %v229_v0  ;;  %v306_v19 = vadd.f32 %v539_v17, %v305_v18 }
  0xb9   :  { %354 = vmatpush.msrb.mxu0 %v228_v1 }
  0xbb   :  { %355 = vmatpush.msrb.mxu0 %v227_v2 }
  0xbd   :  { %356 = vmatpush.msrb.mxu0 %v226_v3 }
  0xbf   :  { %357 = vmatpush.msrb.mxu0 %v225_v4 }
  0xc1   :  { %358 = vmatpush.msrb.mxu0 %v224_v5 }
  0xc3   :  { %359 = vmatpush.msrb.mxu0 %v223_v6  ;;  %v325_v20 = vpop.f32.mrf.mxu2 }
  0xc4   :  { %v326_v21 = vadd.f32 %v325_v20, %v306_v19 }
  0xc5   :  { %360 = vmatpush.msrb.mxu0 %v222_v7  ;;  %v345_v22 = vpop.f32.mrf.mxu3 }
  0xc6   :  { %v346_v23 = vadd.f32 %v345_v22, %v326_v21 }
  0xc7   :  { %361 = vmatpush.msrb.mxu0 %v221_v8 }
  0xc9   :  { %362 = vmatpush.msrb.mxu0 %v220_v9 }
  0xcb   :  { %363 = vmatpush.msrb.mxu0 %v219_v10 }
  0xcc   :  { %364 = vmatmul.f32.vlgmr.msrb.gmra.mxu0 %v279_v11 }
  0xd6   :  { %v385_v25 = vpop.f32.mrf.mxu1 }
  0xd9   :  { %v405_v27 = vpop.f32.mrf.mxu2 }
 0x129   :  { %v166_v13 = vpop.f32.mrf.mxu0 }
 0x12a   :  { %v167_v14 = vadd.f32 %v538_v12, %v166_v13 }
 0x12c   :  { %v408_v15 = vmul.f32 %v167_v14, %v167_v14 }
 0x12e   :  { %v410_v16 = vsel %vm409_vm1, %v408_v15, 0.0 }
 0x12f   :  { %411 = vadd.xlane.f32.xlu1 %v410_v16 }
 0x149   :  { %v365_v24 = vpop.f32.mrf.mxu0 }
 0x14a   :  { %v366_v26 = vadd.f32 %v365_v24, %v346_v23 }
 0x14c   :  { %v386_v28 = vadd.f32 %v385_v25, %v366_v26 }
 0x14e   :  { %v406_v29 = vadd.f32 %v405_v27, %v386_v28 }
 0x150   :  { %v425_v30 = vmul.f32 %v406_v29, %v406_v29 }
 0x152   :  { %v426_v31 = vsel %vm409_vm1, %v425_v30, 0.0 }
 0x153   :  { %427 = vadd.xlane.f32.xlu0 %v426_v31 }
 0x1a2   :  { %v412_v32 = vpop.xlane.xlu1 %411 }
 0x1a3   :  { %v413_v33 = vmax.f32 %v412_v32, 1e-16 }
 0x1a5   :  { %540 = vrsqrt.f32 %v413_v33  ;;  %vm420_vm2 = vweird.f32 %v413_v33 }
 0x1a6   :  { %542 = vpow2.f32 %v447_v43 }
 0x1ab   :  { %v541_v34 = vpop.eup %540 }
 0x1ac   :  { %v415_v35 = vmul.f32 %v541_v34, %v413_v33  ;;  %vm421_vm3 = vweird.f32 %v541_v34  ;;  %v543_v46 = vpop.eup %542 }
 0x1ad   :  { %vm422_vm4 = vmor %vm420_vm2, %vm421_vm3  ;;  %525 = vpush %v543_v46 }
 0x1ae   :  { %v416_v36 = vmul.f32 %v541_v34, %v415_v35 }
 0x1b0   :  { %v417_v37 = vmul.f32 0.5, %v416_v36 }
 0x1b2   :  { %v418_v38 = vsub.f32 1.5, %v417_v37 }
 0x1b4   :  { %v419_v39 = vmul.f32 %v541_v34, %v418_v38 }
 0x1b6   :  { %v423_v40 = vsel %vm422_vm4, %v541_v34, %v419_v39 }
 0x1b7   :  { %v424_v41 = vmul.f32 %v423_v40, %v167_v14 }
 0x1b9   :  { %441 = vst [vmem:[#allocation12] sm:$0x3] %v424_v41 }
 0x1ba   :  { %484 = dma.vmem_to_hbm [thread:$0]  %s480_s27, 32, %s482_s1, [#allocation6]  }
 0x1c6   :  { %v428_v44 = vpop.xlane.xlu0 %427 }
 0x1c7   :  { %v429_v45 = vmax.f32 %v428_v44, 1e-16 }
 0x1c9   :  { %544 = vrsqrt.f32 %v429_v45  ;;  %vm436_vm6 = vweird.f32 %v429_v45 }
 0x1cf   :  { %v545_v47 = vpop.eup %544 }
 0x1d0   :  { %v431_v48 = vmul.f32 %v545_v47, %v429_v45  ;;  %vm437_vm5 = vweird.f32 %v545_v47 }
 0x1d1   :  { %vm438_vm7 = vmor %vm436_vm6, %vm437_vm5 }
 0x1d2   :  { %v432_v49 = vmul.f32 %v545_v47, %v431_v48 }
 0x1d4   :  { %v433_v50 = vmul.f32 0.5, %v432_v49 }
 0x1d6   :  { %v434_v51 = vsub.f32 1.5, %v433_v50 }
 0x1d8   :  { %v435_v52 = vmul.f32 %v545_v47, %v434_v51 }
 0x1da   :  { %v439_v53 = vsel %vm438_vm7, %v545_v47, %v435_v52 }
 0x1db   :  { %v440_v54 = vmul.f32 %v439_v53, %v406_v29 }
 0x1dd   :  { %465 = vmatpush.xpose.msrb.mxu3 %v440_v54  ;;  %442 = vst [vmem:[#allocation13] sm:$0x3] %v440_v54 }
 0x1de   :  { %495 = dma.vmem_to_hbm [thread:$0]  %s491_s20, 32, %s493_s23, [#allocation14]  }
 0x1df   :  { %s526_s28 = spop %525 }
 0x1e0   :  { %466 = vmatmul.f32.vlgmr.msrb.gmra.mxu3 %v424_v41  ;;  %v470_v55 = vstv %s526_s28 }
 0x263   :  { %v467_v56 = vpop.f32.mrf.mxu3 }
 0x264   :  { %v471_v57 = vmul.f32 %v470_v55, %v467_v56 }
 0x266   :  { %473 = vst.msk [vmem:[#allocation15] sm:$0x3] %vm472_vm8, %v471_v57 }
 0x267   :  { %506 = dma.vmem_to_hbm [thread:$0]  %s502_s0, 32, %s504_s9, [#allocation14]  }
 0x268   :  { %720 = dma.done.wait [#allocation6], 32  }
 0x269   :  { %721 = vsyncadd [#allocation6], 4294967264 }
 0x26a   :  { %722 = dma.done.wait [#allocation14], 64  }
 0x26b   :  { %723 = vsyncadd [#allocation14], 4294967232 }
 0x26c   :  { %519 = vsyncpa [#allocation5], 1 }
 0x26d   :  { %520 = vsyncpa [#allocation8], 1 }
 0x26e   :  { %521 = vsyncpa [#allocation11], 1 }
 0x26f   :  { %522 = vsyncpa [#allocation6], 1 }
 0x270   :  { %523 = vsyncpa [#allocation14], 1 }

</bundles_post_ra>
